<compile_context>
chip_gen: v6e
topology: v6e:2x2x1
jax: 0.10.0
libtpu: 0.0.40
codegen_flags: <defaults>
</compile_context>

<pallas_src>
import jax
import jax.numpy as jnp
from jax.experimental import pallas as pl
from jax.experimental.pallas import tpu as pltpu

EPS = 1e-07


def _round_up(v, m):
    return ((v + m - 1) // m) * m


def _make_kernel(matmul_dtype):
    def att_layer_kernel(x_ref, w_ref, b_ref, u_ref, o_ref):
        # x_ref:(TB,S,D)  w_ref:(D,A)  b_ref:(1,A)  u_ref:(1,A)  o_ref:(TB,D)
        TB, S, D = x_ref.shape
        A = w_ref.shape[1]

        # ---- Pass 1: attention weights.  This read of x dies at the matmul,
        # so the big block is never live across the whole kernel body.
        x_mm = x_ref[...].reshape(TB * S, D)   # layout-free when S % 8 == 0
        uit = jnp.tanh(
            jnp.dot(x_mm.astype(matmul_dtype),
                    w_ref[...].astype(matmul_dtype),
                    preferred_element_type=jnp.float32)
            + b_ref[0]
        )                                                        # (TB*S, A) f32
        # TODO(synk): on v6e/v7x the tanh/exp could run in bf16 on the EUP for
        # ~2x transcendental throughput; kept f32 here for v5e parity.
        uit = uit.reshape(TB, S, A)

        # Rank-1 projection: VPU multiply + XLU lane reduce (no N=1 MXU push).
        # keepdims keeps S on the sublane axis from here on.
        logit = jnp.sum(uit * u_ref[0], axis=-1, keepdims=True)   # (TB,S,1)

        # Unstable exp-softmax over the sequence axis, exactly as in torch:
        # no max subtraction, epsilon added to the denominator.
        e = jnp.exp(logit)                                        # (TB,S,1)
        denom = jnp.sum(e, axis=1, keepdims=True) + EPS           # (TB,1,1)
        a = e * (1.0 / denom)                                     # exact f32 divide

        # ---- Pass 2: weighted sum over S.  Fresh read of x (short live range);
        # (TB,S,1) broadcast against (TB,S,D) is a cheap lane splat.
        o_ref[...] = jnp.sum(x_ref[...] * a, axis=1).astype(o_ref.dtype)

    return att_layer_kernel


def _vmem_working_set_bytes(tb, S, D, A):
    """Conservative estimate of the kernel's scoped-VMEM working set (f32)."""
    s_pad = _round_up(S, 8)
    d_pad = _round_up(D, 128)
    a_pad = _round_up(A, 128)
    per_row = 4 * (
        2 * s_pad * d_pad          # x input block, double-buffered
        + 2 * d_pad                # output block, double-buffered
        + s_pad * a_pad            # uit intermediate
        + s_pad * d_pad            # weighted-input / reduction temporaries
        + 4 * s_pad * 128          # logit / e / a lane-padded temporaries
    )
    fixed = 4 * (2 * _round_up(D, 8) * a_pad   # W, double-buffered
                 + 4 * a_pad)                  # b, u
    return fixed + tb * per_row, per_row, fixed


def _pick_tb(B, S, D, A, vmem_target_bytes):
    """Batch rows per grid step: VMEM-bounded AND keeps >= ~4 grid steps."""
    _, per_row, fixed = _vmem_working_set_bytes(1, S, D, A)
    slack = 2 * 1024 * 1024
    tb_vmem = max(1, (vmem_target_bytes - fixed - slack) // per_row)
    tb_steps = max(1, -(-B // 4))      # >= 4 steps when B allows (pipelining, megacore)
    tb = min(tb_vmem, tb_steps)
    if B <= 8 or tb >= B:
        return B
    # (TB, D) output block: TB must be a multiple of 8 when it does not span B.
    return max(8, (tb // 8) * 8)


def att_layer_forward(x, W, b, u, *, matmul_dtype=jnp.bfloat16):
    """x:(B,S,D) f32; W:(D,A); b:(A,); u:(A,1).  Returns (B,D) f32."""
    B, S, D = x.shape
    A = W.shape[1]
    b2 = b.reshape(1, A)
    u2 = u.reshape(1, A)                     # (A,1) -> lane-dense row vector

    # Generation-aware VMEM budget (v5e/v6e: 128 MiB, v7x: 64 MiB per TC).
    try:
        vmem_capacity = int(pltpu.get_tpu_info().vmem_capacity_bytes)
    except Exception:  # pragma: no cover - conservative fallback
        vmem_capacity = 64 * 1024 * 1024
    vmem_target = min((2 * vmem_capacity) // 5, 48 * 1024 * 1024)

    TB = _pick_tb(B, S, D, A, vmem_target)
    est_bytes, _, _ = _vmem_working_set_bytes(TB, S, D, A)
    vmem_limit = int(min(3 * vmem_capacity // 4,
                         max(est_bytes + 8 * 1024 * 1024, 32 * 1024 * 1024)))
    grid = (pl.cdiv(B, TB),)

    # TODO(synk): if a single (S,D) row no longer fits VMEM (large S*D, esp. on
    # v7x's 64 MiB), tile S on an extra "arbitrary" grid axis with running
    # exp-sum / weighted-sum scratch accumulators.
    # TODO(synk): on v5e, if xprof shows exposed x-stream DMA, try
    # pipeline_mode=pl.Buffered(3) on the x in_spec (within the VMEM budget).
    return pl.pallas_call(
        _make_kernel(matmul_dtype),
        out_shape=jax.ShapeDtypeStruct((B, D), jnp.float32),
        grid_spec=pltpu.PrefetchScalarGridSpec(
            num_scalar_prefetch=0,
            grid=grid,
            in_specs=[
                pl.BlockSpec((TB, S, D), lambda i: (i, 0, 0)),   # x: TB rows/step
                pl.BlockSpec((D, A), lambda i: (0, 0)),          # W: resident
                pl.BlockSpec((1, A), lambda i: (0, 0)),          # b: resident
                pl.BlockSpec((1, A), lambda i: (0, 0)),          # u: resident
            ],
            out_specs=pl.BlockSpec((TB, D), lambda i: (i, 0)),   # lane-dense slab
        ),
        compiler_params=pltpu.CompilerParams(
            dimension_semantics=("parallel",),   # megacore sharding on v7x
            vmem_limit_bytes=vmem_limit,
        ),
    )(x, W, b2, u2)


def att_layer_reference(x, W, b, u, matmul_dtype=jnp.float32):
    """Pure-JAX reference.  HIGHEST precision so f32 mode is true f32 on TPU."""
    uit = jnp.tanh(
        jnp.matmul(x.astype(matmul_dtype), W.astype(matmul_dtype),
                   preferred_element_type=jnp.float32,
                   precision=jax.lax.Precision.HIGHEST)
        + b)
    ait = jnp.squeeze(
        jnp.matmul(uit, u, precision=jax.lax.Precision.HIGHEST), -1)
    ait = jnp.exp(ait)
    ait = ait / (jnp.sum(ait, axis=1, keepdims=True) + EPS)
    return jnp.sum(x * ait[..., None], axis=1)


if __name__ == "__main__":
    # Small shapes consistent with the module's forward: (B, S, input_last),
    # using the module's own default dims (input_last=200, attention_dim=100).
    B, S, D, A = 2, 8, 200, 100

    key = jax.random.PRNGKey(0)
    kx, kw, kb, ku = jax.random.split(key, 4)
    x = jax.random.normal(kx, (B, S, D), dtype=jnp.float32)
    W = jax.random.normal(kw, (D, A), dtype=jnp.float32)
    b = jax.random.normal(kb, (A,), dtype=jnp.float32)
    u = jax.random.normal(ku, (A, 1), dtype=jnp.float32)

    # Exact-precision path: same semantics as the torch module.
    out_f32 = att_layer_forward(x, W, b, u, matmul_dtype=jnp.float32)
    jax.block_until_ready(out_f32)
    ref_f32 = att_layer_reference(x, W, b, u, matmul_dtype=jnp.float32)
    assert out_f32.shape == (B, D)
    assert jnp.allclose(out_f32, ref_f32, atol=2e-3, rtol=2e-3)

    # Default fast path: bf16 MXU inputs with f32 accumulation, validated
    # against a precision-matched reference.
    out_bf16 = att_layer_forward(x, W, b, u)
    jax.block_until_ready(out_bf16)
    ref_bf16 = att_layer_reference(x, W, b, u, matmul_dtype=jnp.bfloat16)
    assert jnp.allclose(out_bf16, ref_bf16, atol=2e-3, rtol=2e-3)

    print("KERNEL_OK")
</pallas_src>

<mosaic_0001>
module attributes {stable_mosaic.version = 11 : i64} {
  func.func @att_layer_kernel(%arg0: i32, %arg1: memref<2x8x200xf32, #tpu.memory_space<vmem>>, %arg2: memref<200x100xf32, #tpu.memory_space<vmem>>, %arg3: memref<1x100xf32, #tpu.memory_space<vmem>>, %arg4: memref<1x100xf32, #tpu.memory_space<vmem>>, %arg5: memref<2x200xf32, #tpu.memory_space<vmem>>) attributes {dimension_semantics = [#tpu.dimension_semantics<parallel>], iteration_bounds = array<i64: 1>, scalar_prefetch = 0 : i64, scratch_operands = 0 : i64, tpu.core_type = #tpu.core_type<tc>, window_params = [{transform_indices = @transform_0, window_bounds = array<i64: 2, 8, 200>}, {pipeline_mode = #tpu.pipeline_mode<synchronous>, transform_indices = @transform_1, window_bounds = array<i64: 200, 100>}, {pipeline_mode = #tpu.pipeline_mode<synchronous>, transform_indices = @transform_2, window_bounds = array<i64: 1, 100>}, {pipeline_mode = #tpu.pipeline_mode<synchronous>, transform_indices = @transform_3, window_bounds = array<i64: 1, 100>}, {transform_indices = @transform_4, window_bounds = array<i64: 2, 200>}]} {
    %c0 = arith.constant 0 : index
    %c0_0 = arith.constant 0 : index
    %c0_1 = arith.constant 0 : index
    %0 = vector.load %arg1[%c0, %c0_0, %c0_1] : memref<2x8x200xf32, #tpu.memory_space<vmem>>, vector<2x8x200xf32>
    %1 = vector.shape_cast %0 : vector<2x8x200xf32> to vector<16x200xf32>
    %c0_2 = arith.constant 0 : index
    %c0_3 = arith.constant 0 : index
    %2 = vector.load %arg2[%c0_2, %c0_3] : memref<200x100xf32, #tpu.memory_space<vmem>>, vector<200x100xf32>
    %cst = arith.constant dense<0.000000e+00> : vector<16x100xf32>
    %3 = tpu.matmul %1, %2, %cst {dimension_numbers = #tpu.dot_dimension_numbers<[1], [0], [0], [1], [0, 0, 1, 1], [], []>} : vector<16x200xf32>, vector<200x100xf32>, vector<16x100xf32> -> vector<16x100xf32>
    %c0_4 = arith.constant 0 : index
    %c0_5 = arith.constant 0 : index
    %4 = vector.load %arg3[%c0_4, %c0_5] : memref<1x100xf32, #tpu.memory_space<vmem>>, vector<1x100xf32>
    %5 = vector.shape_cast %4 : vector<1x100xf32> to vector<100xf32>
    %6 = vector.shape_cast %5 : vector<100xf32> to vector<1x100xf32>
    %7 = vector.broadcast %6 : vector<1x100xf32> to vector<16x100xf32>
    %8 = arith.addf %3, %7 : vector<16x100xf32>
    %9 = math.tanh %8 : vector<16x100xf32>
    %10 = vector.shape_cast %9 : vector<16x100xf32> to vector<2x8x100xf32>
    %c0_6 = arith.constant 0 : index
    %c0_7 = arith.constant 0 : index
    %11 = vector.load %arg4[%c0_6, %c0_7] : memref<1x100xf32, #tpu.memory_space<vmem>>, vector<1x100xf32>
    %12 = vector.shape_cast %11 : vector<1x100xf32> to vector<100xf32>
    %13 = vector.shape_cast %12 : vector<100xf32> to vector<1x1x100xf32>
    %14 = vector.broadcast %13 : vector<1x1x100xf32> to vector<2x8x100xf32>
    %15 = arith.mulf %10, %14 : vector<2x8x100xf32>
    %cst_8 = arith.constant dense<0.000000e+00> : vector<2x8xf32>
    %16 = vector.multi_reduction <add>, %15, %cst_8 [2] : vector<2x8x100xf32> to vector<2x8xf32>
    %17 = vector.shape_cast %16 : vector<2x8xf32> to vector<2x8x1xf32>
    %18 = math.exp %17 : vector<2x8x1xf32>
    %cst_9 = arith.constant dense<0.000000e+00> : vector<2x1xf32>
    %19 = vector.multi_reduction <add>, %18, %cst_9 [1] : vector<2x8x1xf32> to vector<2x1xf32>
    %20 = vector.shape_cast %19 : vector<2x1xf32> to vector<2x1x1xf32>
    %cst_10 = arith.constant 1.000000e-07 : f32
    %21 = vector.broadcast %cst_10 : f32 to vector<2x1x1xf32>
    %22 = arith.addf %20, %21 : vector<2x1x1xf32>
    %cst_11 = arith.constant 1.000000e+00 : f32
    %23 = vector.broadcast %cst_11 : f32 to vector<2x1x1xf32>
    %24 = arith.divf %23, %22 : vector<2x1x1xf32>
    %25 = vector.broadcast %24 : vector<2x1x1xf32> to vector<2x8x1xf32>
    %26 = arith.mulf %18, %25 : vector<2x8x1xf32>
    %c0_12 = arith.constant 0 : index
    %c0_13 = arith.constant 0 : index
    %c0_14 = arith.constant 0 : index
    %27 = vector.load %arg1[%c0_12, %c0_13, %c0_14] : memref<2x8x200xf32, #tpu.memory_space<vmem>>, vector<2x8x200xf32>
    %28 = vector.broadcast %26 : vector<2x8x1xf32> to vector<2x8x200xf32>
    %29 = arith.mulf %27, %28 : vector<2x8x200xf32>
    %cst_15 = arith.constant dense<0.000000e+00> : vector<2x200xf32>
    %30 = vector.multi_reduction <add>, %29, %cst_15 [1] : vector<2x8x200xf32> to vector<2x200xf32>
    %c0_16 = arith.constant 0 : index
    %c0_17 = arith.constant 0 : index
    %31 = vector.load %arg5[%c0_16, %c0_17] : memref<2x200xf32, #tpu.memory_space<vmem>>, vector<2x200xf32>
    tpu.vector_store %arg5[%c0_16, %c0_17], %30 {strides = array<i32>} : memref<2x200xf32, #tpu.memory_space<vmem>>, vector<2x200xf32>,
    return
  }
  func.func @transform_0(%arg0: i32) -> (i32, i32, i32) {
    %c0_i32 = arith.constant 0 : i32
    %c0_i32_0 = arith.constant 0 : i32
    %c0_i32_1 = arith.constant 0 : i32
    return %arg0, %c0_i32, %c0_i32_0 : i32, i32, i32
  }
  func.func @transform_1(%arg0: i32) -> (i32, i32) {
    %c0_i32 = arith.constant 0 : i32
    %c0_i32_0 = arith.constant 0 : i32
    %c0_i32_1 = arith.constant 0 : i32
    return %c0_i32, %c0_i32_0 : i32, i32
  }
  func.func @transform_2(%arg0: i32) -> (i32, i32) {
    %c0_i32 = arith.constant 0 : i32
    %c0_i32_0 = arith.constant 0 : i32
    %c0_i32_1 = arith.constant 0 : i32
    return %c0_i32, %c0_i32_0 : i32, i32
  }
  func.func @transform_3(%arg0: i32) -> (i32, i32) {
    %c0_i32 = arith.constant 0 : i32
    %c0_i32_0 = arith.constant 0 : i32
    %c0_i32_1 = arith.constant 0 : i32
    return %c0_i32, %c0_i32_0 : i32, i32
  }
  func.func @transform_4(%arg0: i32) -> (i32, i32) {
    %c0_i32 = arith.constant 0 : i32
    %c0_i32_0 = arith.constant 0 : i32
    return %arg0, %c0_i32 : i32, i32
  }
}

</mosaic_0001>

<bundles_post_ra>
// kernel: tpu_custom_call.1
= control target key start
LH: loop header
LB: loop body
LE: loop exit
PB: predicated region body
PF: predicated region fallthrough
CT: control target
= control target key end

     0   :  { %9 = vsyncpa [#allocation3], 0  ;;  %s538_s0 = inlined_call_operand.hbm [shape: f32[2,8,200], index: 0, kind: input, shape index: {}]   ;;  %s539_s1 = inlined_call_operand.hbm [shape: f32[200,100], index: 1, kind: input, shape index: {}]   ;;  %s540_s2 = inlined_call_operand.vmem [shape: f32[1,100], index: 2, kind: input, shape index: {}]   ;;  %s541_s3 = inlined_call_operand.vmem [shape: f32[1,100], index: 3, kind: input, shape index: {}]   ;;  %s542_s4 = inlined_call_operand.hbm [shape: f32[2,200], index: 4, kind: output, shape index: {}]  }
   0x1   :  { %10 = vsyncpa [#allocation6], 0 }
   0x2   :  { %11 = vsyncpa [#allocation4], 0  ;;  %s431_s15 = smov [#allocation2]  }
   0x3   :  { %s17_s16 = sshll.u32 %s431_s15, 4  ;;  %s18_s16 = int_to_ptr.vmem [resolvable:$true] %s17_s16 }
   0x4   :  { %s373_s17 = scalar_lea.vmem %s18_s16, 512  ;;  %p378_p1 = scmp.lt.s32.totalorder %s18_s16, %s18_s16 }
   0x5   :  { %p374_p0 = scmp.ne.s32.totalorder %s18_s16, %s373_s17  ;;  %p379_p2 = scmp.lt.s32.totalorder %s373_s17, %s373_s17 }
   0x7   :  { %p380_p3 = por %p379_p2, %p378_p1 }
   0x9   :  { %p381_p4 = pnand %p380_p3, %p374_p0 }
   0xb   :  { %384 = shalt.err (!%p381_p4)
}
   0xc   :  { %s432_s18 = smov 256   ;;  %s433_s19 = smov 16  }
   0xd   :  { %23 = dma.hbm_to_vmem [thread:$0]  %s538_s0, 512, %s18_s16, [#allocation3], %s432_s18, %s432_s18, %s433_s19  }
   0xe   :  { %s434_s22 = smov [#allocation5]  }
   0xf   :  { %s29_s23 = sshll.u32 %s434_s22, 4  ;;  %s30_s23 = int_to_ptr.vmem [resolvable:$true] %s29_s23 }
  0x10   :  { %s393_s24 = scalar_lea.vmem %s30_s23, 3200  ;;  %p398_p6 = scmp.lt.s32.totalorder %s30_s23, %s30_s23 }
  0x11   :  { %p394_p5 = scmp.ne.s32.totalorder %s30_s23, %s393_s24  ;;  %p399_p7 = scmp.lt.s32.totalorder %s393_s24, %s393_s24 }
  0x13   :  { %p400_p8 = por %p399_p7, %p398_p6 }
  0x15   :  { %p401_p9 = pnand %p400_p8, %p394_p5 }
  0x17   :  { %404 = shalt.err (!%p401_p9)
}
  0x18   :  { %s435_s25 = smov 128   ;;  %s436_s26 = smov 8  }
  0x19   :  { %35 = dma.hbm_to_vmem [thread:$0]  %s539_s1, 3200, %s30_s23, [#allocation6], %s435_s25, %s435_s25, %s436_s26  }
  0x1a   :  { %425 = dma.done.wait [#allocation3], 512  }
  0x1b   :  { %426 = vsyncadd [#allocation3], 4294966784 }
  0x1c   :  { %427 = dma.done.wait [#allocation6], 3200  }
  0x1d   :  { %428 = vsyncadd [#allocation6], 4294964096  ;;  %v437_v0 = vmov 0.0   ;;  %v65_v1 = vld [vmem:[#allocation5 + $0x78] sm:$0xff]  ;;  %v64_v2 = vld [vmem:[#allocation5 + $0x70] sm:$0xff]  ;;  %vm82_vm0 = vcmask 588800  }
  0x1e   :  { %294 = vmatprep.subr.mxu1 %v437_v0  ;;  %89 = vmatprep.subr.mxu0 %v437_v0  ;;  %v63_v3 = vld [vmem:[#allocation5 + $0x68] sm:$0xff]  ;;  %v62_v4 = vld [vmem:[#allocation5 + $0x60] sm:$0xff]  ;;  %v61_v5 = vld [vmem:[#allocation5 + $0x58] sm:$0xff]  ;;  %vm175_vm1 = vcmask 818176   ;;  %vm261_vm2 = vcmask 1041409   ;;  %vm263_vm3 = vcmask 1043459  }
  0x1f   :  { %319 = vmatpush1.msra.mxu1 %v65_v1  ;;  %90 = vmatpush1.msra.mxu0 %v65_v1  ;;  %v60_v6 = vld [vmem:[#allocation5 + $0x50] sm:$0xff]  ;;  %v59_v7 = vld [vmem:[#allocation5 + $0x48] sm:$0xff]  ;;  %v58_v8 = vld [vmem:[#allocation5 + $0x40] sm:$0xff]  ;;  %vm270_vm4 = vcmask 1041408   ;;  %vm271_vm5 = vcmask 584706   ;;  %vm265_vm6 = vcmask 1045509  }
  0x20   :  { %295 = vmatprep.subr.mxu1 %v437_v0  ;;  %91 = vmatprep.subr.mxu0 %v437_v0  ;;  %v57_v9 = vld [vmem:[#allocation5 + $0x38] sm:$0xff]  ;;  %v56_v10 = vld [vmem:[#allocation5 + $0x30] sm:$0xff]  ;;  %v55_v11 = vld [vmem:[#allocation5 + $0x28] sm:$0xff]  ;;  %vm267_vm7 = vcmask 1047559  }
  0x21   :  { %320 = vmatpush1.msra.mxu1 %v64_v2  ;;  %92 = vmatpush1.msra.mxu0 %v64_v2  ;;  %v54_v12 = vld [vmem:[#allocation5 + $0x20] sm:$0xff]  ;;  %v53_v13 = vld [vmem:[#allocation5 + $0x18] sm:$0xff]  ;;  %v52_v14 = vld [vmem:[#allocation5 + $0x10] sm:$0xff] }
  0x22   :  { %296 = vmatprep.subr.mxu1 %v437_v0  ;;  %93 = vmatprep.subr.mxu0 %v437_v0  ;;  %v51_v15 = vld [vmem:[#allocation5 + $0x8] sm:$0xff]  ;;  %v50_v16 = vld [vmem:[#allocation5] sm:$0xff]  ;;  %v73_v18 = vld [vmem:[#allocation5 + $0xb8] sm:$0xff] }
  0x23   :  { %321 = vmatpush1.msra.mxu1 %v63_v3  ;;  %94 = vmatpush1.msra.mxu0 %v63_v3  ;;  %v74_v17 = vld [vmem:[#allocation5 + $0xc0] sm:$0xff]  ;;  %v72_v19 = vld [vmem:[#allocation5 + $0xb0] sm:$0xff]  ;;  %v71_v20 = vld [vmem:[#allocation5 + $0xa8] sm:$0xff] }
  0x24   :  { %297 = vmatprep.subr.mxu1 %v437_v0  ;;  %95 = vmatprep.subr.mxu0 %v437_v0  ;;  %v70_v21 = vld [vmem:[#allocation5 + $0xa0] sm:$0xff]  ;;  %v69_v22 = vld [vmem:[#allocation5 + $0x98] sm:$0xff]  ;;  %v68_v23 = vld [vmem:[#allocation5 + $0x90] sm:$0xff] }
  0x25   :  { %322 = vmatpush1.msra.mxu1 %v62_v4  ;;  %96 = vmatpush1.msra.mxu0 %v62_v4  ;;  %v67_v24 = vld [vmem:[#allocation5 + $0x88] sm:$0xff]  ;;  %v517_v25 = vld [vmem:[#allocation2 + $0x18] sm:$0xff]  ;;  %v66_v26 = vld [vmem:[#allocation5 + $0x80] sm:$0xff] }
  0x26   :  { %298 = vmatprep.subr.mxu1 %v437_v0  ;;  %97 = vmatprep.subr.mxu0 %v437_v0  ;;  %v48_v27 = vld [vmem:[#allocation2 + $0x10] sm:$0xff]  ;;  %v47_v28 = vld [vmem:[#allocation2 + $0x8] sm:$0xff]  ;;  %v46_v29 = vld [vmem:[#allocation2] sm:$0xff] }
  0x27   :  { %323 = vmatpush1.msra.mxu1 %v61_v5  ;;  %98 = vmatpush1.msra.mxu0 %v61_v5  ;;  %v290_v30 = vld [vmem:[%s540_s2] ss:$0 sm:$0xff]  ;;  %s439_s2 = smov [#allocation7]   ;;  %vm272_vm8 = vmor %vm271_vm5, %vm270_vm4 }
  0x28   :  { %299 = vmatprep.subr.mxu1 %v437_v0  ;;  %99 = vmatprep.subr.mxu0 %v437_v0  ;;  %v293_v37 = vld [vmem:[%s541_s3] ss:$0 sm:$0xff]  ;;  %s280_s3 = sshll.u32 %s439_s2, 4  ;;  %s281_s3 = int_to_ptr.vmem [resolvable:$true] %s280_s3 }
  0x29   :  { %324 = vmatpush1.msra.mxu1 %v60_v6  ;;  %100 = vmatpush1.msra.mxu0 %v60_v6  ;;  %s405_s5 = scalar_lea.vmem %s281_s3, 64  ;;  %p410_p11 = scmp.lt.s32.totalorder %s281_s3, %s281_s3 }
  0x2a   :  { %300 = vmatprep.subr.mxu1 %v437_v0  ;;  %101 = vmatprep.subr.mxu0 %v437_v0  ;;  %p406_p10 = scmp.ne.s32.totalorder %s281_s3, %s405_s5  ;;  %p411_p12 = scmp.lt.s32.totalorder %s405_s5, %s405_s5 }
  0x2b   :  { %325 = vmatpush1.msra.mxu1 %v59_v7  ;;  %102 = vmatpush1.msra.mxu0 %v59_v7 }
  0x2c   :  { %301 = vmatprep.subr.mxu1 %v437_v0  ;;  %103 = vmatprep.subr.mxu0 %v437_v0  ;;  %p412_p13 = por %p411_p12, %p410_p11 }
  0x2d   :  { %326 = vmatpush1.msra.mxu1 %v58_v8  ;;  %104 = vmatpush1.msra.mxu0 %v58_v8 }
  0x2e   :  { %302 = vmatprep.subr.mxu1 %v437_v0  ;;  %105 = vmatprep.subr.mxu0 %v437_v0  ;;  %p413_p0 = pnand %p412_p13, %p406_p10 }
  0x2f   :  { %327 = vmatpush1.msra.mxu1 %v57_v9  ;;  %106 = vmatpush1.msra.mxu0 %v57_v9 }
  0x30   :  { %303 = vmatprep.subr.mxu1 %v437_v0  ;;  %107 = vmatprep.subr.mxu0 %v437_v0 }
  0x31   :  { %328 = vmatpush1.msra.mxu1 %v56_v10  ;;  %108 = vmatpush1.msra.mxu0 %v56_v10 }
  0x32   :  { %304 = vmatprep.subr.mxu1 %v437_v0  ;;  %109 = vmatprep.subr.mxu0 %v437_v0 }
  0x33   :  { %329 = vmatpush1.msra.mxu1 %v55_v11  ;;  %110 = vmatpush1.msra.mxu0 %v55_v11 }
  0x34   :  { %305 = vmatprep.subr.mxu1 %v437_v0  ;;  %111 = vmatprep.subr.mxu0 %v437_v0 }
  0x35   :  { %330 = vmatpush1.msra.mxu1 %v54_v12  ;;  %112 = vmatpush1.msra.mxu0 %v54_v12 }
  0x36   :  { %306 = vmatprep.subr.mxu1 %v437_v0  ;;  %113 = vmatprep.subr.mxu0 %v437_v0 }
  0x37   :  { %331 = vmatpush1.msra.mxu1 %v53_v13  ;;  %114 = vmatpush1.msra.mxu0 %v53_v13  ;;  %v438_v13 = vmov 1983009808  }
  0x38   :  { %307 = vmatprep.subr.mxu1 %v437_v0  ;;  %115 = vmatprep.subr.mxu0 %v437_v0 }
  0x39   :  { %332 = vmatpush1.msra.mxu1 %v52_v14  ;;  %116 = vmatpush1.msra.mxu0 %v52_v14  ;;  %v242_v14 = vunpack.c.l.s4 %v438_v13 }
  0x3a   :  { %308 = vmatprep.subr.mxu1 %v437_v0  ;;  %117 = vmatprep.subr.mxu0 %v437_v0 }
  0x3b   :  { %333 = vmatpush1.msra.mxu1 %v51_v15  ;;  %118 = vmatpush1.msra.mxu0 %v51_v15  ;;  %v244_v15 = vlaneseq }
  0x3c   :  { %309 = vmatprep.subr.mxu1 %v437_v0  ;;  %119 = vmatprep.subr.mxu0 %v437_v0 }
  0x3d   :  { %334 = vmatpush1.msra.mxu1 %v50_v16  ;;  %120 = vmatpush1.msra.mxu0 %v50_v16 }
  0x3e   :  { %310 = vmatprep.subr.mxu1 %v437_v0  ;;  %135 = vmatprep.subr.mxu0 %v437_v0 }
  0x3f   :  { %335 = vmatpush2.msra.mxu1 %v74_v17  ;;  %136 = vmatpush2.msra.mxu0 %v74_v17 }
  0x40   :  { %311 = vmatprep.subr.mxu1 %v437_v0  ;;  %137 = vmatprep.subr.mxu0 %v437_v0 }
  0x41   :  { %336 = vmatpush2.msra.mxu1 %v73_v18  ;;  %138 = vmatpush2.msra.mxu0 %v73_v18 }
  0x42   :  { %312 = vmatprep.subr.mxu1 %v437_v0  ;;  %139 = vmatprep.subr.mxu0 %v437_v0 }
  0x43   :  { %337 = vmatpush2.msra.mxu1 %v72_v19  ;;  %140 = vmatpush2.msra.mxu0 %v72_v19 }
  0x44   :  { %313 = vmatprep.subr.mxu1 %v437_v0  ;;  %141 = vmatprep.subr.mxu0 %v437_v0 }
  0x45   :  { %338 = vmatpush2.msra.mxu1 %v71_v20  ;;  %142 = vmatpush2.msra.mxu0 %v71_v20 }
  0x46   :  { %314 = vmatprep.subr.mxu1 %v437_v0  ;;  %143 = vmatprep.subr.mxu0 %v437_v0 }
  0x47   :  { %339 = vmatpush2.msra.mxu1 %v70_v21  ;;  %144 = vmatpush2.msra.mxu0 %v70_v21 }
  0x48   :  { %315 = vmatprep.subr.mxu1 %v437_v0  ;;  %145 = vmatprep.subr.mxu0 %v437_v0 }
  0x49   :  { %340 = vmatpush2.msra.mxu1 %v69_v22  ;;  %146 = vmatpush2.msra.mxu0 %v69_v22 }
  0x4a   :  { %316 = vmatprep.subr.mxu1 %v437_v0  ;;  %147 = vmatprep.subr.mxu0 %v437_v0 }
  0x4b   :  { %341 = vmatpush2.msra.mxu1 %v68_v23  ;;  %148 = vmatpush2.msra.mxu0 %v68_v23 }
  0x4c   :  { %317 = vmatprep.subr.mxu1 %v437_v0  ;;  %149 = vmatprep.subr.mxu0 %v437_v0 }
  0x4d   :  { %342 = vmatpush2.msra.mxu1 %v67_v24  ;;  %150 = vmatpush2.msra.mxu0 %v67_v24 }
  0x4e   :  { %318 = vmatprep.subr.mxu1 %v437_v0  ;;  %292 = vmatprep.mubr.msk.f32.mxu1 %vm82_vm0, %v517_v25 }
  0x4f   :  { %343 = vmatpush2.msra.mxu1 %v66_v26  ;;  %151 = vmatprep.subr.mxu0 %v437_v0 }
  0x50   :  { %159 = vmatmul.mubr.f32.vlgmr.msra.gmra.mxu1 %v48_v27  ;;  %152 = vmatpush2.msra.mxu0 %v66_v26  ;;  %v245_v26 = vshrl.u32 %v244_v15, 7 }
  0x51   :  { %291 = vmatprep.mubr.msk.f32.mxu0 %vm82_vm0, %v47_v28 }
  0x52   :  { %154 = vmatmul.mubr.f32.vlgmr.msra.gmra.mxu0 %v46_v29 }
 0x110   :  { %v160_v31 = vpop.f32.mrf.mxu1 }
 0x111   :  { %v161_v32 = vadd.f32 %v290_v30, %v160_v31 }
 0x112   :  { %v155_v33 = vpop.f32.mrf.mxu0  ;;  %v162_v34 = vpop.f32.mrf.mxu1 }
 0x113   :  { %353 = vtanh.f32 %v161_v32  ;;  %v156_v35 = vadd.f32 %v290_v30, %v155_v33 }
 0x114   :  { %v157_v36 = vpop.f32.mrf.mxu0 }
 0x115   :  { %355 = vtanh.f32 %v156_v35 }
 0x120   :  { %v354_v38 = vpop.eup %353 }
 0x121   :  { %v174_v39 = vmul.f32 %v354_v38, %v293_v37 }
 0x122   :  { %v356_v40 = vpop.eup %355 }
 0x123   :  { %v179_v41 = vsel %vm175_vm1, %v174_v39, 0.0  ;;  %v173_v42 = vmul.f32 %v356_v40, %v293_v37 }
 0x124   :  { %180 = vadd.xlane.f32.xlu0 %v179_v41 }
 0x125   :  { %v176_v43 = vsel %vm175_vm1, %v173_v42, 0.0 }
 0x128   :  { %177 = vadd.xlane.f32.xlu0 %v176_v43 }
 0x1ad   :  { %v181_v44 = vpop.xlane.xlu0 %180 }
 0x1ae   :  { %v184_v45 = vmul.f32 1.442695, %v181_v44 }
 0x1b0   :  { %357 = vpow2.f32 %v184_v45 }
 0x1b1   :  { %v178_v46 = vpop.xlane.xlu0 %177 }
 0x1b2   :  { %v182_v47 = vmul.f32 1.442695, %v178_v46 }
 0x1b4   :  { %359 = vpow2.f32 %v182_v47 }
 0x1bd   :  { %v358_v48 = vpop.eup %357 }
 0x1be   :  { %v192_v49 = vrot.slane %v358_v48, 4 }
 0x1c0   :  { %v193_v50 = vadd.f32 %v358_v48, %v192_v49 }
 0x1c1   :  { %v360_v51 = vpop.eup %359 }
 0x1c2   :  { %v194_v52 = vrot.slane %v193_v50, 2  ;;  %v186_v53 = vrot.slane %v360_v51, 4 }
 0x1c4   :  { %v195_v54 = vadd.f32 %v194_v52, %v193_v50  ;;  %v187_v55 = vadd.f32 %v360_v51, %v186_v53 }
 0x1c6   :  { %v196_v56 = vrot.slane %v195_v54, 1  ;;  %v188_v57 = vrot.slane %v187_v55, 2 }
 0x1c8   :  { %v197_v58 = vadd.f32 %v196_v56, %v195_v54  ;;  %v189_v59 = vadd.f32 %v188_v57, %v187_v55 }
 0x1ca   :  { %v199_v60 = vadd.f32 1e-07, %v197_v58  ;;  %v190_v61 = vrot.slane %v189_v59, 1 }
 0x1cc   :  { %361 = vrcp.f32 %v199_v60  ;;  %v191_v62 = vadd.f32 %v190_v61, %v189_v59 }
 0x1ce   :  { %v198_v63 = vadd.f32 1e-07, %v191_v62 }
 0x1d0   :  { %363 = vrcp.f32 %v198_v63 }
 0x1d9   :  { %v362_v0 = vpop.eup %361 }
 0x1da   :  { %v205_v1 = vmul.f32 %v362_v0, %v358_v48 }
 0x1dc   :  { %v208_v2 = vmul.f32 %v205_v1, %v48_v27  ;;  %v209_v3 = vmul.f32 %v205_v1, %v517_v25  ;;  %v243_v25 = vunpack.c.0.s8 %v242_v14 }
 0x1dd   :  { %v364_v4 = vpop.eup %363 }
 0x1de   :  { %v204_v5 = vmul.f32 %v364_v4, %v360_v51  ;;  %v223_v6 = vrot.slane %v208_v2, 4  ;;  %v229_v7 = vsel %vm82_vm0, %v209_v3, 0.0  ;;  %v246_v35 = vsub.s32 %v243_v25, %v245_v26 }
 0x1df   :  { %v230_v8 = vrot.slane %v229_v7, 4 }
 0x1e0   :  { %v206_v9 = vmul.f32 %v204_v5, %v46_v29  ;;  %v207_v10 = vmul.f32 %v204_v5, %v47_v28  ;;  %v224_v11 = vadd.f32 %v223_v6, %v208_v2 }
 0x1e1   :  { %v231_v12 = vadd.f32 %v230_v8, %v229_v7 }
 0x1e2   :  { %v210_v16 = vrot.slane %v206_v9, 4  ;;  %v216_v17 = vsel %vm82_vm0, %v207_v10, 0.0  ;;  %v225_v18 = vrot.slane %v224_v11, 2 }
 0x1e3   :  { %v217_v19 = vrot.slane %v216_v17, 4  ;;  %v232_v20 = vrot.slane %v231_v12, 2 }
 0x1e4   :  { %v211_v21 = vadd.f32 %v210_v16, %v206_v9  ;;  %v226_v22 = vadd.f32 %v225_v18, %v224_v11 }
 0x1e5   :  { %v218_v23 = vadd.f32 %v217_v19, %v216_v17  ;;  %v233_v24 = vadd.f32 %v232_v20, %v231_v12 }
 0x1e6   :  { %v212_v27 = vrot.slane %v211_v21, 2  ;;  %v227_v29 = vrot.slane %v226_v22, 1 }
 0x1e7   :  { %v219_v28 = vrot.slane %v218_v23, 2  ;;  %v234_v30 = vrot.slane %v233_v24, 1 }
 0x1e8   :  { %v213_v31 = vadd.f32 %v212_v27, %v211_v21  ;;  %v228_v32 = vadd.f32 %v227_v29, %v226_v22 }
 0x1e9   :  { %v220_v33 = vadd.f32 %v219_v28, %v218_v23  ;;  %v235_v34 = vadd.f32 %v234_v30, %v233_v24 }
 0x1ea   :  { %v214_v36 = vrot.slane %v213_v31, 1 }
 0x1eb   :  { %v221_v37 = vrot.slane %v220_v33, 1  ;;  %v248_v38 = vcombine.low %v228_v32, %v235_v34 }
 0x1ec   :  { %v215_v39 = vadd.f32 %v214_v36, %v213_v31 }
 0x1ed   :  { %v222_v40 = vadd.f32 %v221_v37, %v220_v33  ;;  %v255_v41 = vrot.slane %v248_v38, %v246_v35 }
 0x1ef   :  { %v240_v42 = vcombine.low %v215_v39, %v222_v40  ;;  %v260_v44 = vrot.slane %v255_v41, 7 }
 0x1f1   :  { %v247_v43 = vrot.slane %v240_v42, %v246_v35 }
 0x1f3   :  { %v262_v45 = vsel %vm261_vm2, %v260_v44, %v247_v43 }
 0x1f4   :  { %v264_v46 = vsel %vm263_vm3, %v260_v44, %v262_v45 }
 0x1f5   :  { %v266_v47 = vsel %vm265_vm6, %v260_v44, %v264_v46 }
 0x1f6   :  { %v268_v48 = vsel %vm267_vm7, %v260_v44, %v266_v47 }
 0x1f7   :  { %273 = vst.msk [vmem:[#allocation7] sm:$0xf] %vm272_vm8, %v268_v48 }
 0x1f8   :  { %416 = shalt.err (!%p413_p0)
}
 0x1f9   :  { %283 = dma.vmem_to_hbm [thread:$0]  %s281_s3, 64, %s542_s4, [#allocation4]  }
 0x1fa   :  { %429 = dma.done.wait [#allocation4], 64  }
 0x1fb   :  { %430 = vsyncadd [#allocation4], 4294967232 }
 0x1fc   :  { %287 = vsyncpa [#allocation3], 1 }
 0x1fd   :  { %288 = vsyncpa [#allocation6], 1 }
 0x1fe   :  { %289 = vsyncpa [#allocation4], 1 }

</bundles_post_ra>
